<compile_context>
chip_gen: v6e
topology: v6e:2x2x1
jax: 0.10.0
libtpu: 0.0.40
codegen_flags: <defaults>
</compile_context>

<pallas_src>
import functools
import math

import jax
import jax.numpy as jnp
from jax.experimental import pallas as pl
from jax.experimental.pallas import tpu as pltpu

NP = 9   # derived per-batch parameters fed to the kernel
TB = 8   # batch rows processed per grid step (one full sublane tile)


def mvn_profile_kernel(par_ref, pos_ref, out_ref, *, n_valid):
    # par_ref: (TB, NP) f32  [mu_x, mu_y, mu_z, 1/l00, l10, 1/l11, l20, l21, 1/l22]
    # pos_ref: (3, N_pad) f32 (row0 = x, row1 = y, row2 = z; pixels on lanes)
    # out_ref: (TB, N_pad) f32
    par = par_ref[...]
    mu_x = par[:, 0:1]
    mu_y = par[:, 1:2]
    mu_z = par[:, 2:3]
    inv_l00 = par[:, 3:4]
    l10 = par[:, 4:5]
    inv_l11 = par[:, 5:6]
    l20 = par[:, 6:7]
    l21 = par[:, 7:8]
    inv_l22 = par[:, 8:9]

    px = pos_ref[0:1, :]   # (1, N_pad)
    py = pos_ref[1:2, :]
    pz = pos_ref[2:3, :]

    # (TB, N_pad) working set: pure VPU multiplies/adds, no divides.
    d0 = px - mu_x
    d1 = py - mu_y
    d2 = pz - mu_z

    # Forward substitution: solve L z = (x - mu) using precomputed reciprocals.
    z0 = d0 * inv_l00
    z1 = (d1 - l10 * z0) * inv_l11
    z2 = (d2 - l20 * z0 - l21 * z1) * inv_l22
    maha = z0 * z0 + z1 * z1 + z2 * z2

    # log_prob = -0.5*(3*log(2*pi) + maha) - log|det L|.  The per-row constant
    # (-0.5*3*log(2*pi) - log|det L|) cancels exactly in the max-subtract +
    # normalize below, so only -0.5*maha is carried on the N-wide path.
    logp = -0.5 * maha                                           # (TB, N_pad)

    n_pad = out_ref.shape[-1]
    if n_valid < n_pad:
        lane = jax.lax.broadcasted_iota(jnp.int32, logp.shape, 1)
        logp = jnp.where(lane < n_valid, logp, -jnp.inf)

    # Stabilized normalization over the pixel axis.
    m = jnp.max(logp, axis=-1, keepdims=True)
    p = jnp.exp(logp - m)
    s = jnp.sum(p, axis=-1, keepdims=True)
    out_ref[...] = p * (1.0 / (s + 1e-10))   # per-row reciprocal (TB scalars), N-wide multiply


def mvn_profile(representation, w_mean, b_mean, w_scale, b_scale, pixel_positions, *, tb=TB):
    """representation: (B, D) f32; pixel_positions: (N, 3) f32 (x, y, z columns)."""
    B, _ = representation.shape
    N = pixel_positions.shape[0]

    # --- per-batch derived parameters (tiny GEMM + elementwise), hoisted out of the kernel ---
    rep = representation.astype(jnp.float32)
    means = rep @ w_mean.astype(jnp.float32) + b_mean.astype(jnp.float32)                       # (B, 3)
    scales = jax.nn.elu(rep @ w_scale.astype(jnp.float32) + b_scale.astype(jnp.float32)) + 1.0  # (B, 6)
    sp = jax.nn.softplus
    l00, l11, l22 = sp(scales[:, 0]), sp(scales[:, 2]), sp(scales[:, 5])   # softplus on diagonal
    l10, l20, l21 = scales[:, 1], scales[:, 3], scales[:, 4]               # row-major tril fill
    params = jnp.stack(
        [means[:, 0], means[:, 1], means[:, 2],
         1.0 / l00, l10, 1.0 / l11, l20, l21, 1.0 / l22],
        axis=-1,
    ).astype(jnp.float32)                                                  # (B, NP)

    # --- padding: batch to a multiple of TB, pixels to a multiple of 128 (lane-dense) ---
    B_pad = ((B + tb - 1) // tb) * tb
    N_pad = ((N + 127) // 128) * 128
    params_p = jnp.zeros((B_pad, NP), jnp.float32).at[:B].set(params)      # zero rows are inert
    pos = jnp.zeros((3, N_pad), jnp.float32).at[:, :N].set(
        pixel_positions.T.astype(jnp.float32))

    # --- VMEM budget: double-buffered params/out blocks, resident pos block, headroom ---
    block_bytes = 4 * (tb * NP + 3 * N_pad + tb * N_pad)
    vmem_limit = min(int(2 * block_bytes + (4 << 20)), 64 * 1024 * 1024)

    out = pl.pallas_call(
        functools.partial(mvn_profile_kernel, n_valid=N),
        out_shape=jax.ShapeDtypeStruct((B_pad, N_pad), jnp.float32),
        grid=(B_pad // tb,),
        in_specs=[
            pl.BlockSpec((tb, NP), lambda i: (i, 0)),       # per-batch derived params
            pl.BlockSpec((3, N_pad), lambda i: (0, 0)),     # grid-invariant pixel coords
        ],
        out_specs=pl.BlockSpec((tb, N_pad), lambda i: (i, 0)),
        compiler_params=pltpu.CompilerParams(
            dimension_semantics=("parallel",),
            vmem_limit_bytes=vmem_limit,
        ),
    )(params_p, pos)
    return out[:B, :N]


def mvn_profile_ref(representation, w_mean, b_mean, w_scale, b_scale, pixel_positions):
    """Pure-JAX reference of the PyTorch forward pass (full log_prob, incl. constants)."""
    means = representation @ w_mean + b_mean                       # (B, 3)
    scales = jax.nn.elu(representation @ w_scale + b_scale) + 1.0  # (B, 6)
    sp = jax.nn.softplus
    l00, l11, l22 = sp(scales[:, 0]), sp(scales[:, 2]), sp(scales[:, 5])
    l10, l20, l21 = scales[:, 1], scales[:, 3], scales[:, 4]

    d = pixel_positions[None, :, :] - means[:, None, :]            # (B, N, 3)
    z0 = d[..., 0] / l00[:, None]
    z1 = (d[..., 1] - l10[:, None] * z0) / l11[:, None]
    z2 = (d[..., 2] - l20[:, None] * z0 - l21[:, None] * z1) / l22[:, None]
    maha = z0 * z0 + z1 * z1 + z2 * z2
    half_log_det = (jnp.log(l00) + jnp.log(l11) + jnp.log(l22))[:, None]
    logp = -0.5 * (3.0 * math.log(2.0 * math.pi) + maha) - half_log_det
    logp = logp - jnp.max(logp, axis=1, keepdims=True)
    p = jnp.exp(logp)
    return p / (jnp.sum(p, axis=1, keepdims=True) + 1e-10)


def make_pixel_positions(image_shape):
    d, h, w = image_shape
    z = jnp.arange(d, dtype=jnp.float32) - (d - 1) / 2.0
    y = jnp.arange(h, dtype=jnp.float32) - (h - 1) / 2.0
    x = jnp.arange(w, dtype=jnp.float32) - (w - 1) / 2.0
    zz = jnp.broadcast_to(z[:, None, None], (d, h, w))
    yy = jnp.broadcast_to(y[None, :, None], (d, h, w))
    xx = jnp.broadcast_to(x[None, None, :], (d, h, w))
    return jnp.stack([xx, yy, zz], axis=-1).reshape(-1, 3)         # (N, 3)


if __name__ == "__main__":
    B, D = 2, 32
    image_shape = (2, 16, 16)       # N = 512 pixels
    N = image_shape[0] * image_shape[1] * image_shape[2]

    key = jax.random.PRNGKey(0)
    k_rep, k_wm, k_bm, k_ws, k_bs = jax.random.split(key, 5)
    representation = jax.random.normal(k_rep, (B, D), jnp.float32)
    w_mean = 0.1 * jax.random.normal(k_wm, (D, 3), jnp.float32)
    b_mean = 0.1 * jax.random.normal(k_bm, (3,), jnp.float32)
    w_scale = 0.1 * jax.random.normal(k_ws, (D, 6), jnp.float32)
    b_scale = 0.1 * jax.random.normal(k_bs, (6,), jnp.float32)
    pixel_positions = make_pixel_positions(image_shape)

    profile = mvn_profile(representation, w_mean, b_mean, w_scale, b_scale, pixel_positions)
    profile = jax.block_until_ready(profile)

    ref = mvn_profile_ref(representation, w_mean, b_mean, w_scale, b_scale, pixel_positions)
    assert profile.shape == (B, N)
    assert jnp.allclose(profile, ref, atol=1e-5, rtol=1e-5), "mismatch vs reference"

    print("KERNEL_OK")
</pallas_src>

<mosaic_0001>
module attributes {stable_mosaic.version = 11 : i64} {
  func.func @mvn_profile_kernel(%arg0: i32, %arg1: memref<8x9xf32, #tpu.memory_space<vmem>>, %arg2: memref<3x512xf32, #tpu.memory_space<vmem>>, %arg3: memref<8x512xf32, #tpu.memory_space<vmem>>) attributes {dimension_semantics = [#tpu.dimension_semantics<parallel>], iteration_bounds = array<i64: 1>, scalar_prefetch = 0 : i64, scratch_operands = 0 : i64, tpu.core_type = #tpu.core_type<tc>, window_params = [{transform_indices = @transform_0, window_bounds = array<i64: 8, 9>}, {pipeline_mode = #tpu.pipeline_mode<synchronous>, transform_indices = @transform_1, window_bounds = array<i64: 3, 512>}, {transform_indices = @transform_2, window_bounds = array<i64: 8, 512>}]} {
    %c0 = arith.constant 0 : index
    %c0_0 = arith.constant 0 : index
    %0 = vector.load %arg1[%c0, %c0_0] : memref<8x9xf32, #tpu.memory_space<vmem>>, vector<8x9xf32>
    %1 = vector.extract_strided_slice %0 {offsets = [0, 0], sizes = [8, 1], strides = [1, 1]} : vector<8x9xf32> to vector<8x1xf32>
    %2 = vector.extract_strided_slice %0 {offsets = [0, 1], sizes = [8, 1], strides = [1, 1]} : vector<8x9xf32> to vector<8x1xf32>
    %3 = vector.extract_strided_slice %0 {offsets = [0, 2], sizes = [8, 1], strides = [1, 1]} : vector<8x9xf32> to vector<8x1xf32>
    %4 = vector.extract_strided_slice %0 {offsets = [0, 3], sizes = [8, 1], strides = [1, 1]} : vector<8x9xf32> to vector<8x1xf32>
    %5 = vector.extract_strided_slice %0 {offsets = [0, 4], sizes = [8, 1], strides = [1, 1]} : vector<8x9xf32> to vector<8x1xf32>
    %6 = vector.extract_strided_slice %0 {offsets = [0, 5], sizes = [8, 1], strides = [1, 1]} : vector<8x9xf32> to vector<8x1xf32>
    %7 = vector.extract_strided_slice %0 {offsets = [0, 6], sizes = [8, 1], strides = [1, 1]} : vector<8x9xf32> to vector<8x1xf32>
    %8 = vector.extract_strided_slice %0 {offsets = [0, 7], sizes = [8, 1], strides = [1, 1]} : vector<8x9xf32> to vector<8x1xf32>
    %9 = vector.extract_strided_slice %0 {offsets = [0, 8], sizes = [8, 1], strides = [1, 1]} : vector<8x9xf32> to vector<8x1xf32>
    %c0_1 = arith.constant 0 : index
    %c0_2 = arith.constant 0 : index
    %10 = vector.load %arg2[%c0_1, %c0_2] : memref<3x512xf32, #tpu.memory_space<vmem>>, vector<1x512xf32>
    %c1 = arith.constant 1 : index
    %c0_3 = arith.constant 0 : index
    %11 = vector.load %arg2[%c1, %c0_3] : memref<3x512xf32, #tpu.memory_space<vmem>>, vector<1x512xf32>
    %c2 = arith.constant 2 : index
    %c0_4 = arith.constant 0 : index
    %12 = vector.load %arg2[%c2, %c0_4] : memref<3x512xf32, #tpu.memory_space<vmem>>, vector<1x512xf32>
    %13 = vector.broadcast %10 : vector<1x512xf32> to vector<8x512xf32>
    %14 = vector.broadcast %1 : vector<8x1xf32> to vector<8x512xf32>
    %15 = arith.subf %13, %14 : vector<8x512xf32>
    %16 = vector.broadcast %11 : vector<1x512xf32> to vector<8x512xf32>
    %17 = vector.broadcast %2 : vector<8x1xf32> to vector<8x512xf32>
    %18 = arith.subf %16, %17 : vector<8x512xf32>
    %19 = vector.broadcast %12 : vector<1x512xf32> to vector<8x512xf32>
    %20 = vector.broadcast %3 : vector<8x1xf32> to vector<8x512xf32>
    %21 = arith.subf %19, %20 : vector<8x512xf32>
    %22 = vector.broadcast %4 : vector<8x1xf32> to vector<8x512xf32>
    %23 = arith.mulf %15, %22 : vector<8x512xf32>
    %24 = vector.broadcast %5 : vector<8x1xf32> to vector<8x512xf32>
    %25 = arith.mulf %24, %23 : vector<8x512xf32>
    %26 = arith.subf %18, %25 : vector<8x512xf32>
    %27 = vector.broadcast %6 : vector<8x1xf32> to vector<8x512xf32>
    %28 = arith.mulf %26, %27 : vector<8x512xf32>
    %29 = vector.broadcast %7 : vector<8x1xf32> to vector<8x512xf32>
    %30 = arith.mulf %29, %23 : vector<8x512xf32>
    %31 = arith.subf %21, %30 : vector<8x512xf32>
    %32 = vector.broadcast %8 : vector<8x1xf32> to vector<8x512xf32>
    %33 = arith.mulf %32, %28 : vector<8x512xf32>
    %34 = arith.subf %31, %33 : vector<8x512xf32>
    %35 = vector.broadcast %9 : vector<8x1xf32> to vector<8x512xf32>
    %36 = arith.mulf %34, %35 : vector<8x512xf32>
    %37 = arith.mulf %23, %23 : vector<8x512xf32>
    %38 = arith.mulf %28, %28 : vector<8x512xf32>
    %39 = arith.addf %37, %38 : vector<8x512xf32>
    %40 = arith.mulf %36, %36 : vector<8x512xf32>
    %41 = arith.addf %39, %40 : vector<8x512xf32>
    %cst = arith.constant -5.000000e-01 : f32
    %42 = vector.broadcast %cst : f32 to vector<8x512xf32>
    %43 = arith.mulf %42, %41 : vector<8x512xf32>
    %cst_5 = arith.constant dense<0xFF800000> : vector<8xf32>
    %44 = vector.multi_reduction <maximumf>, %43, %cst_5 [1] : vector<8x512xf32> to vector<8xf32>
    %45 = vector.shape_cast %44 : vector<8xf32> to vector<8x1xf32>
    %46 = vector.broadcast %45 : vector<8x1xf32> to vector<8x512xf32>
    %47 = arith.subf %43, %46 : vector<8x512xf32>
    %48 = math.exp %47 : vector<8x512xf32>
    %cst_6 = arith.constant dense<0.000000e+00> : vector<8xf32>
    %49 = vector.multi_reduction <add>, %48, %cst_6 [1] : vector<8x512xf32> to vector<8xf32>
    %50 = vector.shape_cast %49 : vector<8xf32> to vector<8x1xf32>
    %cst_7 = arith.constant 1.000000e-10 : f32
    %51 = vector.broadcast %cst_7 : f32 to vector<8x1xf32>
    %52 = arith.addf %50, %51 : vector<8x1xf32>
    %cst_8 = arith.constant 1.000000e+00 : f32
    %53 = vector.broadcast %cst_8 : f32 to vector<8x1xf32>
    %54 = arith.divf %53, %52 : vector<8x1xf32>
    %55 = vector.broadcast %54 : vector<8x1xf32> to vector<8x512xf32>
    %56 = arith.mulf %48, %55 : vector<8x512xf32>
    %c0_9 = arith.constant 0 : index
    %c0_10 = arith.constant 0 : index
    %57 = vector.load %arg3[%c0_9, %c0_10] : memref<8x512xf32, #tpu.memory_space<vmem>>, vector<8x512xf32>
    tpu.vector_store %arg3[%c0_9, %c0_10], %56 {strides = array<i32>} : memref<8x512xf32, #tpu.memory_space<vmem>>, vector<8x512xf32>,
    return
  }
  func.func @transform_0(%arg0: i32) -> (i32, i32) {
    %c0_i32 = arith.constant 0 : i32
    %c0_i32_0 = arith.constant 0 : i32
    return %arg0, %c0_i32 : i32, i32
  }
  func.func @transform_1(%arg0: i32) -> (i32, i32) {
    %c0_i32 = arith.constant 0 : i32
    %c0_i32_0 = arith.constant 0 : i32
    %c0_i32_1 = arith.constant 0 : i32
    return %c0_i32, %c0_i32_0 : i32, i32
  }
  func.func @transform_2(%arg0: i32) -> (i32, i32) {
    %c0_i32 = arith.constant 0 : i32
    %c0_i32_0 = arith.constant 0 : i32
    return %arg0, %c0_i32 : i32, i32
  }
}

</mosaic_0001>

<bundles_post_ra>
// kernel: tpu_custom_call.1
= control target key start
LH: loop header
LB: loop body
LE: loop exit
PB: predicated region body
PF: predicated region fallthrough
CT: control target
= control target key end

     0   :  { %7 = vsyncpa [#allocation3], 0  ;;  %s396_s0 = inlined_call_operand.hbm [shape: f32[8,9], index: 0, kind: input, shape index: {}]   ;;  %s397_s1 = inlined_call_operand.hbm [shape: f32[3,512], index: 1, kind: input, shape index: {}]   ;;  %s398_s2 = inlined_call_operand.hbm [shape: f32[8,512], index: 2, kind: output, shape index: {}]  }
   0x1   :  { %8 = vsyncpa [#allocation6], 0 }
   0x2   :  { %9 = vsyncpa [#allocation4], 0  ;;  %s360_s9 = smov [#allocation2]   ;;  %s361_s11 = smov [#allocation5]  }
   0x3   :  { %s16_s10 = sshll.u32 %s360_s9, 4  ;;  %s26_s12 = sshll.u32 %s361_s11, 4  ;;  %s17_s10 = int_to_ptr.vmem [resolvable:$true] %s16_s10  ;;  %s27_s12 = int_to_ptr.vmem [resolvable:$true] %s26_s12 }
   0x4   :  { %s302_s13 = scalar_lea.vmem %s17_s10, 128  ;;  %p307_p1 = scmp.lt.s32.totalorder %s17_s10, %s17_s10 }
   0x5   :  { %p303_p0 = scmp.ne.s32.totalorder %s17_s10, %s302_s13  ;;  %p308_p2 = scmp.lt.s32.totalorder %s302_s13, %s302_s13 }
   0x7   :  { %p309_p3 = por %p308_p2, %p307_p1 }
   0x9   :  { %p310_p4 = pnand %p309_p3, %p303_p0 }
   0xb   :  { %313 = shalt.err (!%p310_p4)
}
   0xc   :  { %19 = dma.hbm_to_vmem [thread:$0]  %s396_s0, 128, %s17_s10, [#allocation3]  }
   0xd   :  { %s322_s16 = scalar_lea.vmem %s27_s12, 256  ;;  %p327_p6 = scmp.lt.s32.totalorder %s27_s12, %s27_s12 }
   0xe   :  { %p323_p5 = scmp.ne.s32.totalorder %s27_s12, %s322_s16  ;;  %p328_p7 = scmp.lt.s32.totalorder %s322_s16, %s322_s16 }
  0x10   :  { %p329_p8 = por %p328_p7, %p327_p6 }
  0x12   :  { %p330_p9 = pnand %p329_p8, %p323_p5 }
  0x14   :  { %333 = shalt.err (!%p330_p9)
}
  0x15   :  { %29 = dma.hbm_to_vmem [thread:$0]  %s397_s1, 256, %s27_s12, [#allocation6]  }
  0x16   :  { %354 = dma.done.wait [#allocation3], 128  }
  0x17   :  { %355 = vsyncadd [#allocation3], 4294967168 }
  0x18   :  { %356 = dma.done.wait [#allocation6], 256  }
  0x19   :  { %357 = vsyncadd [#allocation6], 4294967040  ;;  %v362_v0 = vmov 1   ;;  %v363_v1 = vmov 0   ;;  %v36_v2 = vld [vmem:[#allocation2] sm:$0xff]  ;;  %v364_v3 = vmov 4   ;;  %v43_v10 = vlaneseq }
  0x1a   :  { %277 = vset.pattern.permute.xlu1 %v362_v0  ;;  %275 = vset.pattern.permute.xlu0 %v363_v1  ;;  %v365_v4 = vmov 3   ;;  %v366_v5 = vmov 2   ;;  %v367_v6 = vmov 5   ;;  %v368_v7 = vmov 6   ;;  %s371_s0 = smov [#allocation7]  }
  0x1b   :  { %94 = vperm.xlu1 %277, %v36_v2   ;;  %65 = vperm.xlu0 %275, %v36_v2   ;;  %v369_v8 = vmov 8   ;;  %v370_v9 = vmov 7   ;;  %v44_v11 = vshrl.u32 %v43_v10, 7  ;;  %v37_v12 = vld [vmem:[#allocation5] ss:$4 sm:$0xf] }
  0x1c   :  { %v39_v27 = vld [vmem:[#allocation5 + $0x1] ss:$4 sm:$0xf]  ;;  %v41_v38 = vld [vmem:[#allocation5 + $0x2] ss:$4 sm:$0xf] }
  0x1d   :  { %v45_v13 = vsub.s32 0, %v44_v11  ;;  %v49_v14 = vsub.s32 1, %v44_v11  ;;  %v53_v15 = vsub.s32 2, %v44_v11  ;;  %v57_v16 = vsub.s32 3, %v44_v11  ;;  %s253_s1 = sshll.u32 %s371_s0, 4  ;;  %s254_s1 = int_to_ptr.vmem [resolvable:$true] %s253_s1 }
  0x1e   :  { %s334_s19 = scalar_lea.vmem %s254_s1, 512  ;;  %p339_p11 = scmp.lt.s32.totalorder %s254_s1, %s254_s1 }
  0x1f   :  { %278 = vset.pattern.permute.xlu1 %v364_v3  ;;  %276 = vset.pattern.permute.xlu0 %v365_v4  ;;  %v46_v17 = vrot.slane %v37_v12, %v45_v13  ;;  %v50_v18 = vrot.slane %v37_v12, %v49_v14  ;;  %v54_v19 = vrot.slane %v37_v12, %v53_v15  ;;  %p335_p10 = scmp.ne.s32.totalorder %s254_s1, %s334_s19  ;;  %p340_p12 = scmp.lt.s32.totalorder %s334_s19, %s334_s19 }
  0x20   :  { %139 = vperm.xlu1 %278, %v36_v2   ;;  %131 = vperm.xlu0 %276, %v36_v2   ;;  %v58_v20 = vrot.slane %v37_v12, %v57_v16  ;;  %v76_v34 = vrot.slane %v39_v27, %v45_v13  ;;  %v80_v35 = vrot.slane %v39_v27, %v49_v14 }
  0x21   :  { %v84_v36 = vrot.slane %v39_v27, %v53_v15  ;;  %v88_v37 = vrot.slane %v39_v27, %v57_v16  ;;  %v105_v48 = vrot.slane %v41_v38, %v45_v13  ;;  %v109_v49 = vrot.slane %v41_v38, %v49_v14  ;;  %p341_p13 = por %p340_p12, %p339_p11 }
  0x22   :  { %v113_v50 = vrot.slane %v41_v38, %v53_v15  ;;  %v117_v51 = vrot.slane %v41_v38, %v57_v16 }
  0x23   :  { %p342_p0 = pnand %p341_p13, %p335_p10 }
  0x24   :  { %279 = vset.pattern.permute.xlu1 %v366_v5  ;;  %280 = vset.pattern.permute.xlu0 %v367_v6 }
  0x25   :  { %123 = vperm.xlu1 %279, %v36_v2   ;;  %151 = vperm.xlu0 %280, %v36_v2  }
  0x29   :  { %281 = vset.pattern.permute.xlu1 %v368_v7  ;;  %283 = vset.pattern.permute.xlu0 %v369_v8 }
  0x2a   :  { %159 = vperm.xlu1 %281, %v36_v2   ;;  %183 = vperm.xlu0 %283, %v36_v2  }
  0x2e   :  { %282 = vset.pattern.permute.xlu1 %v370_v9 }
  0x2f   :  { %171 = vperm.xlu1 %282, %v36_v2  }
  0x96   :  { %v95_v21 = vpop.permute.xlu1 %94  ;;  %v66_v22 = vpop.permute.xlu0 %65 }
  0x97   :  { %v68_v23 = vsub.f32 %v46_v17, %v66_v22  ;;  %v69_v24 = vsub.f32 %v50_v18, %v66_v22  ;;  %v70_v25 = vsub.f32 %v54_v19, %v66_v22  ;;  %v71_v26 = vsub.f32 %v58_v20, %v66_v22 }
  0x98   :  { %v97_v44 = vsub.f32 %v76_v34, %v95_v21  ;;  %v98_v45 = vsub.f32 %v80_v35, %v95_v21  ;;  %v99_v46 = vsub.f32 %v84_v36, %v95_v21  ;;  %v100_v47 = vsub.f32 %v88_v37, %v95_v21 }
  0x9b   :  { %v140_v28 = vpop.permute.xlu1 %139  ;;  %v132_v29 = vpop.permute.xlu0 %131 }
  0x9c   :  { %v134_v30 = vmul.f32 %v132_v29, %v68_v23  ;;  %v135_v31 = vmul.f32 %v132_v29, %v69_v24  ;;  %v136_v32 = vmul.f32 %v132_v29, %v70_v25  ;;  %v137_v33 = vmul.f32 %v132_v29, %v71_v26 }
  0x9e   :  { %v142_v40 = vmul.f32 %v140_v28, %v134_v30  ;;  %v143_v41 = vmul.f32 %v140_v28, %v135_v31  ;;  %v144_v42 = vmul.f32 %v140_v28, %v136_v32  ;;  %v145_v43 = vmul.f32 %v140_v28, %v137_v33 }
  0x9f   :  { %v190_v24 = vmul.f32 %v134_v30, %v134_v30  ;;  %v191_v25 = vmul.f32 %v135_v31, %v135_v31  ;;  %v192_v26 = vmul.f32 %v136_v32, %v136_v32  ;;  %v193_v27 = vmul.f32 %v137_v33, %v137_v33 }
  0xa0   :  { %v124_v39 = vpop.permute.xlu1 %123  ;;  %v146_v52 = vsub.f32 %v97_v44, %v142_v40  ;;  %v147_v53 = vsub.f32 %v98_v45, %v143_v41  ;;  %v148_v54 = vsub.f32 %v99_v46, %v144_v42  ;;  %v149_v55 = vsub.f32 %v100_v47, %v145_v43  ;;  %v152_v56 = vpop.permute.xlu0 %151 }
  0xa1   :  { %v126_v62 = vsub.f32 %v105_v48, %v124_v39  ;;  %v127_v63 = vsub.f32 %v109_v49, %v124_v39  ;;  %v128_v0 = vsub.f32 %v113_v50, %v124_v39  ;;  %v129_v1 = vsub.f32 %v117_v51, %v124_v39 }
  0xa2   :  { %v154_v2 = vmul.f32 %v152_v56, %v146_v52  ;;  %v155_v3 = vmul.f32 %v152_v56, %v147_v53  ;;  %v156_v4 = vmul.f32 %v152_v56, %v148_v54  ;;  %v157_v5 = vmul.f32 %v152_v56, %v149_v55 }
  0xa4   :  { %v194_v15 = vmul.f32 %v154_v2, %v154_v2  ;;  %v195_v16 = vmul.f32 %v155_v3, %v155_v3  ;;  %v196_v17 = vmul.f32 %v156_v4, %v156_v4  ;;  %v197_v18 = vmul.f32 %v157_v5, %v157_v5 }
  0xa5   :  { %v160_v57 = vpop.permute.xlu1 %159  ;;  %v184_v19 = vpop.permute.xlu0 %183 }
  0xa6   :  { %v162_v58 = vmul.f32 %v160_v57, %v134_v30  ;;  %v163_v59 = vmul.f32 %v160_v57, %v135_v31  ;;  %v164_v60 = vmul.f32 %v160_v57, %v136_v32  ;;  %v165_v61 = vmul.f32 %v160_v57, %v137_v33 }
  0xa7   :  { %v198_v36 = vadd.f32 %v194_v15, %v190_v24  ;;  %v199_v37 = vadd.f32 %v195_v16, %v191_v25  ;;  %v200_v38 = vadd.f32 %v196_v17, %v192_v26  ;;  %v201_v39 = vadd.f32 %v197_v18, %v193_v27 }
  0xa8   :  { %v166_v6 = vsub.f32 %v126_v62, %v162_v58  ;;  %v167_v7 = vsub.f32 %v127_v63, %v163_v59  ;;  %v168_v8 = vsub.f32 %v128_v0, %v164_v60  ;;  %v169_v9 = vsub.f32 %v129_v1, %v165_v61 }
  0xaa   :  { %v172_v10 = vpop.permute.xlu1 %171 }
  0xab   :  { %v174_v11 = vmul.f32 %v172_v10, %v154_v2  ;;  %v175_v12 = vmul.f32 %v172_v10, %v155_v3  ;;  %v176_v13 = vmul.f32 %v172_v10, %v156_v4  ;;  %v177_v14 = vmul.f32 %v172_v10, %v157_v5 }
  0xad   :  { %v178_v20 = vsub.f32 %v166_v6, %v174_v11  ;;  %v179_v21 = vsub.f32 %v167_v7, %v175_v12  ;;  %v180_v22 = vsub.f32 %v168_v8, %v176_v13  ;;  %v181_v23 = vsub.f32 %v169_v9, %v177_v14 }
  0xaf   :  { %v186_v28 = vmul.f32 %v184_v19, %v178_v20  ;;  %v187_v29 = vmul.f32 %v184_v19, %v179_v21  ;;  %v188_v34 = vmul.f32 %v184_v19, %v180_v22  ;;  %v189_v35 = vmul.f32 %v184_v19, %v181_v23 }
  0xb1   :  { %v202_v40 = vmul.f32 %v186_v28, %v186_v28  ;;  %v203_v41 = vmul.f32 %v187_v29, %v187_v29  ;;  %v204_v42 = vmul.f32 %v188_v34, %v188_v34  ;;  %v205_v43 = vmul.f32 %v189_v35, %v189_v35 }
  0xb3   :  { %v206_v44 = vadd.f32 %v202_v40, %v198_v36  ;;  %v207_v45 = vadd.f32 %v203_v41, %v199_v37  ;;  %v208_v46 = vadd.f32 %v204_v42, %v200_v38  ;;  %v209_v47 = vadd.f32 %v205_v43, %v201_v39 }
  0xb5   :  { %v210_v30 = vmul.f32 -0.5, %v206_v44  ;;  %v211_v31 = vmul.f32 -0.5, %v207_v45  ;;  %v212_v32 = vmul.f32 -0.5, %v208_v46  ;;  %v213_v33 = vmul.f32 -0.5, %v209_v47 }
  0xb7   :  { %v214_v48 = vmax.f32 %v210_v30, %v211_v31  ;;  %v215_v49 = vmax.f32 %v212_v32, %v213_v33 }
  0xb9   :  { %v216_v50 = vmax.f32 %v214_v48, %v215_v49 }
  0xbb   :  { %217 = vmax.xlane.f32.xlu1 %v216_v50 }
 0x144   :  { %v218_v51 = vpop.xlane.xlu1 %217 }
 0x145   :  { %v219_v52 = vsub.f32 %v210_v30, %v218_v51  ;;  %v220_v53 = vsub.f32 %v211_v31, %v218_v51  ;;  %v221_v54 = vsub.f32 %v212_v32, %v218_v51  ;;  %v222_v55 = vsub.f32 %v213_v33, %v218_v51 }
 0x147   :  { %v223_v56 = vmul.f32 1.442695, %v219_v52  ;;  %v225_v57 = vmul.f32 1.442695, %v220_v53  ;;  %v227_v58 = vmul.f32 1.442695, %v221_v54 }
 0x148   :  { %v229_v59 = vmul.f32 1.442695, %v222_v55 }
 0x149   :  { %284 = vpow2.f32 %v223_v56 }
 0x14a   :  { %286 = vpow2.f32 %v225_v57 }
 0x14b   :  { %288 = vpow2.f32 %v227_v58 }
 0x14c   :  { %290 = vpow2.f32 %v229_v59 }
 0x156   :  { %v285_v60 = vpop.eup %284 }
 0x157   :  { %v287_v61 = vpop.eup %286 }
 0x158   :  { %v231_v62 = vadd.f32 %v287_v61, %v285_v60  ;;  %v289_v63 = vpop.eup %288 }
 0x159   :  { %v291_v1 = vpop.eup %290 }
 0x15a   :  { %v232_v0 = vadd.f32 %v289_v63, %v231_v62 }
 0x15c   :  { %v233_v2 = vadd.f32 %v291_v1, %v232_v0 }
 0x15e   :  { %234 = vadd.xlane.f32.xlu0 %v233_v2 }
 0x1e7   :  { %v235_v3 = vpop.xlane.xlu0 %234 }
 0x1e8   :  { %v236_v4 = vadd.f32 1e-10, %v235_v3 }
 0x1ea   :  { %292 = vrcp.f32 %v236_v4 }
 0x1f7   :  { %v293_v5 = vpop.eup %292 }
 0x1f8   :  { %v239_v6 = vmul.f32 %v293_v5, %v285_v60  ;;  %v240_v7 = vmul.f32 %v293_v5, %v287_v61  ;;  %v241_v8 = vmul.f32 %v293_v5, %v289_v63  ;;  %v242_v9 = vmul.f32 %v293_v5, %v291_v1 }
 0x1fa   :  { %243 = vst [vmem:[#allocation7] sm:$0xff] %v239_v6  ;;  %244 = vst [vmem:[#allocation7 + $0x8] sm:$0xff] %v240_v7 }
 0x1fb   :  { %245 = vst [vmem:[#allocation7 + $0x10] sm:$0xff] %v241_v8  ;;  %246 = vst [vmem:[#allocation7 + $0x18] sm:$0xff] %v242_v9 }
 0x1fc   :  { %345 = shalt.err (!%p342_p0)
}
 0x1fd   :  { %256 = dma.vmem_to_hbm [thread:$0]  %s254_s1, 512, %s398_s2, [#allocation4]  }
 0x1fe   :  { %358 = dma.done.wait [#allocation4], 512  }
 0x1ff   :  { %359 = vsyncadd [#allocation4], 4294966784 }
 0x200   :  { %260 = vsyncpa [#allocation3], 1 }
 0x201   :  { %261 = vsyncpa [#allocation6], 1 }
 0x202   :  { %262 = vsyncpa [#allocation4], 1 }

</bundles_post_ra>
